<compile_context>
chip_gen: v5e
topology: v5e:2x2
jax: 0.10.0
libtpu: 0.0.40
codegen_flags: <defaults>
</compile_context>

<pallas_src>
import functools
import math

import jax
import jax.numpy as jnp
from jax import lax
from jax.experimental import pallas as pl
from jax.experimental.pallas import tpu as pltpu


def _round_up(x, m):
    return ((x + m - 1) // m) * m


def _vmem_capacity_bytes():
    """Trace-time VMEM capacity; conservative fallback (v7x per-core)."""
    try:
        info = pltpu.get_tpu_info()
        cap = getattr(info, "vmem_capacity_bytes", None)
        if cap:
            return int(cap)
    except Exception:
        pass
    return 64 * 1024 * 1024


def _pick_batch_block(B, n_q_steps, step_bytes_fn, vmem_budget, min_grid=4):
    """Largest divisor of B keeping >= min_grid (relaxed to 2, then 1) total
    grid steps (pipelining + v7x megacore) and fitting the VMEM budget."""
    divisors = [d for d in range(1, B + 1) if B % d == 0]
    for min_steps in (min_grid, 2, 1):
        cands = [d for d in divisors
                 if (B // d) * n_q_steps >= min_steps
                 and step_bytes_fn(d) <= vmem_budget]
        if cands:
            return max(cands)
    return 1


def _self_attention_kernel(x_ref, w_ref, b_ref, out_ref, att_ref, k_sc, v_sc,
                           *, s_real, dk_size, d_pad, tq, n_q):
    Bb, Sp, D_in = x_ref.shape
    Dp = d_pad
    qi = pl.program_id(1)

    # ---- K/V projection: once per batch block, kept resident in VMEM ----
    @pl.when(qi == 0)
    def _():
        x2 = x_ref[...].reshape(Bb * Sp, D_in)
        kv = jnp.dot(x2, w_ref[:, Dp:], preferred_element_type=jnp.float32)
        kv = jnp.maximum(kv + b_ref[:, Dp:], 0.0)               # bias + ReLU
        k_sc[...] = kv[:, :Dp].reshape(Bb, Sp, Dp)
        v_sc[...] = kv[:, Dp:].reshape(Bb, Sp, Dp).astype(v_sc.dtype)

    # ---- Q projection for this query tile only ----
    if n_q == 1:
        xq = x_ref[:, :tq, :]
    else:
        q0 = pl.multiple_of(qi * tq, 8)
        xq = x_ref[:, pl.ds(q0, tq), :]
    xq = xq.reshape(Bb * tq, D_in)
    q = jnp.dot(xq, w_ref[:, :Dp], preferred_element_type=jnp.float32)
    q = jnp.maximum(q + b_ref[:, :Dp], 0.0).reshape(Bb, tq, Dp)

    # ---- Scores: batched Q @ K^T (contract feature dim, no transpose) ----
    att = jnp.einsum("bqd,bkd->bqk", q, k_sc[...],
                     preferred_element_type=jnp.float32)        # (Bb, tq, Sp)
    att_ref[...] = att.astype(att_ref.dtype)                    # pre-scale, as in torch

    # ---- Scaled softmax over real keys only (mask padded key columns) ----
    inv_sqrt_dk = 1.0 / math.sqrt(dk_size)
    if s_real < Sp:
        col = lax.broadcasted_iota(jnp.int32, (1, 1, Sp), 2)    # broadcasts; no big iota
        scores = jnp.where(col < s_real, att * inv_sqrt_dk, -1e30)
    else:
        scores = att * inv_sqrt_dk
    m = jnp.max(scores, axis=-1, keepdims=True)
    e = jnp.exp(scores - m)
    denom = jnp.sum(e, axis=-1, keepdims=True)                  # (Bb, tq, 1)

    # ---- Weighted combination P @ V with deferred normalization ----
    out = jnp.einsum("bqk,bkd->bqd", e.astype(v_sc.dtype), v_sc[...],
                     preferred_element_type=jnp.float32)        # (Bb, tq, Dp)
    inv = pl.reciprocal(denom, approx=True)                     # EUP vrcp
    inv = inv * (2.0 - denom * inv)                             # 1 Newton step: near-exact
    out_ref[...] = (out * inv).astype(out_ref.dtype)


def self_attention(x, wq, wk, wv, bq, bk, bv):
    """x: [B, S, D_in]; weights: [D_in, D_out]; biases: [D_out].

    Returns (out_combine [B, S, D_out], att [B, S, S]) matching the PyTorch
    module's (out_combine, att).
    """
    B, S, D_in = x.shape
    D_out = wq.shape[1]
    dk_size = D_out

    Sp = _round_up(S, 128)       # key axis (lane axis of att)  -> 128-aligned
    Dp = _round_up(D_out, 128)   # projection width (lane axis of out)

    # Query (sublane) axis: multiple of 8 only; tile it once it gets large so
    # the per-step live set is ~tq*Sp (keeps v7x within its 64 MiB VMEM).
    Sq8 = _round_up(S, 8)
    tq = Sq8 if Sq8 <= 512 else 128
    Sq = _round_up(S, tq)
    n_q = Sq // tq

    # Fused, zero-padded QKV weight (D_in, 3*Dp) and bias (1, 3*Dp).
    # Padded columns have zero weight & zero bias -> ReLU keeps them exactly 0.
    pad_w = lambda w: jnp.pad(w, ((0, 0), (0, Dp - D_out)))
    pad_b = lambda b: jnp.pad(b, ((0, Dp - D_out),))
    w_fused = jnp.concatenate([pad_w(wq), pad_w(wk), pad_w(wv)], axis=1)
    b_fused = jnp.concatenate([pad_b(bq), pad_b(bk), pad_b(bv)]).reshape(1, 3 * Dp)

    # Zero-pad the sequence axis once; padded KEY columns are masked inside the
    # kernel, padded QUERY rows are sliced off below.
    x_p = jnp.pad(x, ((0, 0), (0, Sp - S), (0, 0))) if Sp != S else x

    # --- Batch block sized against actual per-step VMEM footprint ---
    cap = _vmem_capacity_bytes()

    def step_bytes(bb):
        x_blk = bb * Sp * D_in * 4
        out_blk = bb * tq * Dp * 4
        att_blk = bb * tq * Sp * 4
        k_sc = bb * Sp * Dp * 4
        v_sc = bb * Sp * Dp * 2
        w_b = (D_in * 3 * Dp + 3 * Dp) * 4
        return 2 * (x_blk + out_blk + att_blk + w_b) + k_sc + v_sc

    Bb = _pick_batch_block(B, n_q, step_bytes, int(cap * 0.6))
    grid = (B // Bb, n_q)
    vmem_limit = int(min(cap, max(step_bytes(Bb) + (8 << 20), 32 << 20)))

    kernel = functools.partial(_self_attention_kernel,
                               s_real=S, dk_size=dk_size, d_pad=Dp,
                               tq=tq, n_q=n_q)

    # TODO(synk): on v5e (0.82 TB/s HBM), emitting att_p in bfloat16 halves the
    # dominant HBM store stream if downstream tolerates it.
    out_p, att_p = pl.pallas_call(
        kernel,
        out_shape=(
            jax.ShapeDtypeStruct((B, Sq, Dp), x.dtype),
            jax.ShapeDtypeStruct((B, Sq, Sp), x.dtype),
        ),
        grid_spec=pltpu.PrefetchScalarGridSpec(
            num_scalar_prefetch=0,
            grid=grid,
            in_specs=[
                pl.BlockSpec((Bb, Sp, D_in), lambda b, q: (b, 0, 0)),  # x (q-invariant)
                pl.BlockSpec((D_in, 3 * Dp), lambda b, q: (0, 0)),     # fused W (invariant)
                pl.BlockSpec((1, 3 * Dp), lambda b, q: (0, 0)),        # fused b (invariant)
            ],
            out_specs=[
                pl.BlockSpec((Bb, tq, Dp), lambda b, q: (b, q, 0)),    # out_combine (padded)
                pl.BlockSpec((Bb, tq, Sp), lambda b, q: (b, q, 0)),    # att (padded)
            ],
            scratch_shapes=[
                pltpu.VMEM((Bb, Sp, Dp), jnp.float32),    # K (f32: att stays tight)
                pltpu.VMEM((Bb, Sp, Dp), jnp.bfloat16),   # V (bf16 feeds MXU natively)
            ],
        ),
        compiler_params=pltpu.CompilerParams(
            dimension_semantics=("parallel", "arbitrary"),
            vmem_limit_bytes=vmem_limit,
        ),
    )(x_p, w_fused, b_fused)

    # Strip padding (kernel stores lane-dense slabs; logical shapes out here).
    return out_p[:, :S, :D_out], att_p[:, :S, :S]


def _reference(x, wq, wk, wv, bq, bk, bv):
    """Pure-JAX reference mirroring the PyTorch forward."""
    q = jax.nn.relu(jnp.einsum("bsd,de->bse", x, wq) + bq)
    k = jax.nn.relu(jnp.einsum("bsd,de->bse", x, wk) + bk)
    v = jax.nn.relu(jnp.einsum("bsd,de->bse", x, wv) + bv)
    att = jnp.einsum("bqe,bke->bqk", q, k)
    probs = jax.nn.softmax(att / math.sqrt(wq.shape[1]), axis=-1)
    out = jnp.einsum("bqk,bke->bqe", probs, v)
    return out, att


if __name__ == "__main__":
    B, S, D_in, D_out = 2, 8, 32, 32

    key = jax.random.PRNGKey(0)
    kx, kwq, kwk, kwv, kbq, kbk, kbv = jax.random.split(key, 7)

    x = jax.random.normal(kx, (B, S, D_in), dtype=jnp.float32)
    # Deterministic parameter init (synthetic; mimics Linear's uniform scale)
    scale = 1.0 / math.sqrt(D_in)
    wq = jax.random.uniform(kwq, (D_in, D_out), jnp.float32, -scale, scale)
    wk = jax.random.uniform(kwk, (D_in, D_out), jnp.float32, -scale, scale)
    wv = jax.random.uniform(kwv, (D_in, D_out), jnp.float32, -scale, scale)
    bq = jax.random.uniform(kbq, (D_out,), jnp.float32, -scale, scale)
    bk = jax.random.uniform(kbk, (D_out,), jnp.float32, -scale, scale)
    bv = jax.random.uniform(kbv, (D_out,), jnp.float32, -scale, scale)

    out, att = self_attention(x, wq, wk, wv, bq, bk, bv)
    out = jax.block_until_ready(out)
    att = jax.block_until_ready(att)

    ref_out, ref_att = _reference(x, wq, wk, wv, bq, bk, bv)
    # att is on the pure f32 MXU path -> tight tolerance; out_combine uses a
    # bf16 P@V matmul (MXU-native) -> ~2^-9 relative error, looser tolerance.
    assert jnp.allclose(att, ref_att, atol=1e-4, rtol=1e-4), "att mismatch"
    assert jnp.allclose(out, ref_out, atol=1e-2, rtol=1e-2), "out mismatch"

    print("KERNEL_OK")
</pallas_src>

<mosaic_0001>
module attributes {stable_mosaic.version = 11 : i64} {
  func.func @_self_attention_kernel(%arg0: i32, %arg1: i32, %arg2: memref<1x128x32xf32, #tpu.memory_space<vmem>>, %arg3: memref<32x384xf32, #tpu.memory_space<vmem>>, %arg4: memref<1x384xf32, #tpu.memory_space<vmem>>, %arg5: memref<1x8x128xf32, #tpu.memory_space<vmem>>, %arg6: memref<1x8x128xf32, #tpu.memory_space<vmem>>, %arg7: memref<1x128x128xf32, #tpu.memory_space<vmem>>, %arg8: memref<1x128x128xbf16, #tpu.memory_space<vmem>>) attributes {dimension_semantics = [#tpu.dimension_semantics<parallel>, #tpu.dimension_semantics<arbitrary>], iteration_bounds = array<i64: 2, 1>, scalar_prefetch = 0 : i64, scratch_operands = 2 : i64, tpu.core_type = #tpu.core_type<tc>, window_params = [{transform_indices = @transform_0, window_bounds = array<i64: 1, 128, 32>}, {pipeline_mode = #tpu.pipeline_mode<synchronous>, transform_indices = @transform_1, window_bounds = array<i64: 32, 384>}, {pipeline_mode = #tpu.pipeline_mode<synchronous>, transform_indices = @transform_2, window_bounds = array<i64: 1, 384>}, {transform_indices = @transform_3, window_bounds = array<i64: 1, 8, 128>}, {transform_indices = @transform_4, window_bounds = array<i64: 1, 8, 128>}]} {
    %c0_i32 = arith.constant 0 : i32
    %0 = arith.cmpi eq, %arg1, %c0_i32 : i32
    %1 = arith.extui %0 : i1 to i32
    %c0_i32_0 = arith.constant 0 : i32
    %2 = arith.cmpi ne, %1, %c0_i32_0 : i32
    scf.if %2 {
      %c0_27 = arith.constant 0 : index
      %c0_28 = arith.constant 0 : index
      %c0_29 = arith.constant 0 : index
      %43 = vector.load %arg2[%c0_27, %c0_28, %c0_29] : memref<1x128x32xf32, #tpu.memory_space<vmem>>, vector<1x128x32xf32>
      %44 = vector.shape_cast %43 : vector<1x128x32xf32> to vector<128x32xf32>
      %c0_30 = arith.constant 0 : index
      %c128 = arith.constant 128 : index
      %45 = vector.load %arg3[%c0_30, %c128] : memref<32x384xf32, #tpu.memory_space<vmem>>, vector<32x256xf32>
      %cst_31 = arith.constant dense<0.000000e+00> : vector<128x256xf32>
      %46 = tpu.matmul %44, %45, %cst_31 {dimension_numbers = #tpu.dot_dimension_numbers<[1], [0], [0], [1], [0, 0, 1, 1], [], []>} : vector<128x32xf32>, vector<32x256xf32>, vector<128x256xf32> -> vector<128x256xf32>
      %c0_32 = arith.constant 0 : index
      %c128_33 = arith.constant 128 : index
      %47 = vector.load %arg4[%c0_32, %c128_33] : memref<1x384xf32, #tpu.memory_space<vmem>>, vector<1x256xf32>
      %48 = vector.broadcast %47 : vector<1x256xf32> to vector<128x256xf32>
      %49 = arith.addf %46, %48 : vector<128x256xf32>
      %cst_34 = arith.constant 0.000000e+00 : f32
      %50 = vector.broadcast %cst_34 : f32 to vector<128x256xf32>
      %51 = arith.maximumf %49, %50 : vector<128x256xf32>
      %52 = vector.extract_strided_slice %51 {offsets = [0, 0], sizes = [128, 128], strides = [1, 1]} : vector<128x256xf32> to vector<128x128xf32>
      %53 = vector.shape_cast %52 : vector<128x128xf32> to vector<1x128x128xf32>
      %c0_35 = arith.constant 0 : index
      %c0_36 = arith.constant 0 : index
      %c0_37 = arith.constant 0 : index
      %54 = vector.load %arg7[%c0_35, %c0_36, %c0_37] : memref<1x128x128xf32, #tpu.memory_space<vmem>>, vector<1x128x128xf32>
      tpu.vector_store %arg7[%c0_35, %c0_36, %c0_37], %53 {strides = array<i32>} : memref<1x128x128xf32, #tpu.memory_space<vmem>>, vector<1x128x128xf32>,
      %55 = vector.extract_strided_slice %51 {offsets = [0, 128], sizes = [128, 128], strides = [1, 1]} : vector<128x256xf32> to vector<128x128xf32>
      %56 = vector.shape_cast %55 : vector<128x128xf32> to vector<1x128x128xf32>
      %57 = arith.truncf %56 : vector<1x128x128xf32> to vector<1x128x128xbf16>
      %c0_38 = arith.constant 0 : index
      %c0_39 = arith.constant 0 : index
      %c0_40 = arith.constant 0 : index
      %58 = vector.load %arg8[%c0_38, %c0_39, %c0_40] : memref<1x128x128xbf16, #tpu.memory_space<vmem>>, vector<1x128x128xbf16>
      tpu.vector_store %arg8[%c0_38, %c0_39, %c0_40], %57 {strides = array<i32>} : memref<1x128x128xbf16, #tpu.memory_space<vmem>>, vector<1x128x128xbf16>,
    } else {
    }
    %c0 = arith.constant 0 : index
    %c0_1 = arith.constant 0 : index
    %c0_2 = arith.constant 0 : index
    %3 = vector.load %arg2[%c0, %c0_1, %c0_2] : memref<1x128x32xf32, #tpu.memory_space<vmem>>, vector<1x8x32xf32>
    %4 = vector.shape_cast %3 : vector<1x8x32xf32> to vector<8x32xf32>
    %c0_3 = arith.constant 0 : index
    %c0_4 = arith.constant 0 : index
    %5 = vector.load %arg3[%c0_3, %c0_4] : memref<32x384xf32, #tpu.memory_space<vmem>>, vector<32x128xf32>
    %cst = arith.constant dense<0.000000e+00> : vector<8x128xf32>
    %6 = tpu.matmul %4, %5, %cst {dimension_numbers = #tpu.dot_dimension_numbers<[1], [0], [0], [1], [0, 0, 1, 1], [], []>} : vector<8x32xf32>, vector<32x128xf32>, vector<8x128xf32> -> vector<8x128xf32>
    %c0_5 = arith.constant 0 : index
    %c0_6 = arith.constant 0 : index
    %7 = vector.load %arg4[%c0_5, %c0_6] : memref<1x384xf32, #tpu.memory_space<vmem>>, vector<1x128xf32>
    %8 = vector.broadcast %7 : vector<1x128xf32> to vector<8x128xf32>
    %9 = arith.addf %6, %8 : vector<8x128xf32>
    %cst_7 = arith.constant 0.000000e+00 : f32
    %10 = vector.broadcast %cst_7 : f32 to vector<8x128xf32>
    %11 = arith.maximumf %9, %10 : vector<8x128xf32>
    %12 = vector.shape_cast %11 : vector<8x128xf32> to vector<1x8x128xf32>
    %c0_8 = arith.constant 0 : index
    %c0_9 = arith.constant 0 : index
    %c0_10 = arith.constant 0 : index
    %13 = vector.load %arg7[%c0_8, %c0_9, %c0_10] : memref<1x128x128xf32, #tpu.memory_space<vmem>>, vector<1x128x128xf32>
    "tpu.trace_start"() <{level = 10 : i32, message = "bqd,bkd->bqk"}> : () -> ()
    %cst_11 = arith.constant dense<0.000000e+00> : vector<1x8x128xf32>
    %14 = tpu.matmul %12, %13, %cst_11 {dimension_numbers = #tpu.dot_dimension_numbers<[2], [2], [1], [1], [0, 0, 0, 1, 1, 1], [0], [0]>} : vector<1x8x128xf32>, vector<1x128x128xf32>, vector<1x8x128xf32> -> vector<1x8x128xf32>
    "tpu.trace_stop"() : () -> ()
    %c0_12 = arith.constant 0 : index
    %c0_13 = arith.constant 0 : index
    %c0_14 = arith.constant 0 : index
    %15 = vector.load %arg6[%c0_12, %c0_13, %c0_14] : memref<1x8x128xf32, #tpu.memory_space<vmem>>, vector<1x8x128xf32>
    tpu.vector_store %arg6[%c0_12, %c0_13, %c0_14], %14 {strides = array<i32>} : memref<1x8x128xf32, #tpu.memory_space<vmem>>, vector<1x8x128xf32>,
    %16 = tpu.iota {dimensions = array<i32: 2>} : vector<1x1x128xi32>
    %c8_i32 = arith.constant 8 : i32
    %17 = vector.broadcast %c8_i32 : i32 to vector<1x1x128xi32>
    %18 = arith.cmpi slt, %16, %17 : vector<1x1x128xi32>
    %cst_15 = arith.constant 0.176776692 : f32
    %19 = vector.broadcast %cst_15 : f32 to vector<1x8x128xf32>
    %20 = arith.mulf %14, %19 : vector<1x8x128xf32>
    %cst_16 = arith.constant -1.000000e+30 : f32
    %21 = vector.shape_cast %18 : vector<1x1x128xi1> to vector<1x1x128xi1>
    %22 = vector.broadcast %21 : vector<1x1x128xi1> to vector<1x8x128xi1>
    %23 = vector.broadcast %cst_16 : f32 to vector<1x8x128xf32>
    %24 = arith.select %22, %20, %23 : vector<1x8x128xi1>, vector<1x8x128xf32>
    %cst_17 = arith.constant dense<0xFF800000> : vector<1x8xf32>
    %25 = vector.multi_reduction <maximumf>, %24, %cst_17 [2] : vector<1x8x128xf32> to vector<1x8xf32>
    %26 = vector.shape_cast %25 : vector<1x8xf32> to vector<1x8x1xf32>
    %27 = vector.broadcast %26 : vector<1x8x1xf32> to vector<1x8x128xf32>
    %28 = arith.subf %24, %27 : vector<1x8x128xf32>
    %29 = math.exp %28 : vector<1x8x128xf32>
    %cst_18 = arith.constant dense<0.000000e+00> : vector<1x8xf32>
    %30 = vector.multi_reduction <add>, %29, %cst_18 [2] : vector<1x8x128xf32> to vector<1x8xf32>
    %31 = vector.shape_cast %30 : vector<1x8xf32> to vector<1x8x1xf32>
    %32 = arith.truncf %29 : vector<1x8x128xf32> to vector<1x8x128xbf16>
    %c0_19 = arith.constant 0 : index
    %c0_20 = arith.constant 0 : index
    %c0_21 = arith.constant 0 : index
    %33 = vector.load %arg8[%c0_19, %c0_20, %c0_21] : memref<1x128x128xbf16, #tpu.memory_space<vmem>>, vector<1x128x128xbf16>
    "tpu.trace_start"() <{level = 10 : i32, message = "bqk,bkd->bqd"}> : () -> ()
    %cst_22 = arith.constant dense<0.000000e+00> : vector<1x8x128xf32>
    %34 = tpu.matmul %32, %33, %cst_22 {dimension_numbers = #tpu.dot_dimension_numbers<[2], [1], [1], [2], [0, 0, 0, 1, 1, 2], [0], [0]>} : vector<1x8x128xbf16>, vector<1x128x128xbf16>, vector<1x8x128xf32> -> vector<1x8x128xf32>
    "tpu.trace_stop"() : () -> ()
    %35 = tpu.reciprocal %31 {approx = true} : vector<1x8x1xf32> -> vector<1x8x1xf32>
    %36 = arith.mulf %31, %35 : vector<1x8x1xf32>
    %cst_23 = arith.constant 2.000000e+00 : f32
    %37 = vector.broadcast %cst_23 : f32 to vector<1x8x1xf32>
    %38 = arith.subf %37, %36 : vector<1x8x1xf32>
    %39 = arith.mulf %35, %38 : vector<1x8x1xf32>
    %40 = vector.broadcast %39 : vector<1x8x1xf32> to vector<1x8x128xf32>
    %41 = arith.mulf %34, %40 : vector<1x8x128xf32>
    %c0_24 = arith.constant 0 : index
    %c0_25 = arith.constant 0 : index
    %c0_26 = arith.constant 0 : index
    %42 = vector.load %arg5[%c0_24, %c0_25, %c0_26] : memref<1x8x128xf32, #tpu.memory_space<vmem>>, vector<1x8x128xf32>
    tpu.vector_store %arg5[%c0_24, %c0_25, %c0_26], %41 {strides = array<i32>} : memref<1x8x128xf32, #tpu.memory_space<vmem>>, vector<1x8x128xf32>,
    return
  }
  func.func @transform_0(%arg0: i32, %arg1: i32) -> (i32, i32, i32) {
    %c0_i32 = arith.constant 0 : i32
    %c0_i32_0 = arith.constant 0 : i32
    %c0_i32_1 = arith.constant 0 : i32
    return %arg0, %c0_i32, %c0_i32_0 : i32, i32, i32
  }
  func.func @transform_1(%arg0: i32, %arg1: i32) -> (i32, i32) {
    %c0_i32 = arith.constant 0 : i32
    %c0_i32_0 = arith.constant 0 : i32
    %c0_i32_1 = arith.constant 0 : i32
    return %c0_i32, %c0_i32_0 : i32, i32
  }
  func.func @transform_2(%arg0: i32, %arg1: i32) -> (i32, i32) {
    %c0_i32 = arith.constant 0 : i32
    %c0_i32_0 = arith.constant 0 : i32
    %c0_i32_1 = arith.constant 0 : i32
    return %c0_i32, %c0_i32_0 : i32, i32
  }
  func.func @transform_3(%arg0: i32, %arg1: i32) -> (i32, i32, i32) {
    %c0_i32 = arith.constant 0 : i32
    %c0_i32_0 = arith.constant 0 : i32
    return %arg0, %arg1, %c0_i32 : i32, i32, i32
  }
  func.func @transform_4(%arg0: i32, %arg1: i32) -> (i32, i32, i32) {
    %c0_i32 = arith.constant 0 : i32
    %c0_i32_0 = arith.constant 0 : i32
    return %arg0, %arg1, %c0_i32 : i32, i32, i32
  }
}

</mosaic_0001>

<bundles_post_ra>
// kernel: tpu_custom_call.1
= control target key start
LH: loop header
LB: loop body
LE: loop exit
PB: predicated region body
PF: predicated region fallthrough
CT: control target
= control target key end

     0   :  { %10 = vsyncpa [#allocation5], 0  ;;  %s1445_s0 = inlined_call_operand.vmem [shape: f32[2,128,32], index: 0, kind: input, shape index: {}]   ;;  %s1446_s1 = inlined_call_operand.vmem [shape: f32[32,384], index: 1, kind: input, shape index: {}]   ;;  %s1447_s2 = inlined_call_operand.vmem [shape: f32[1,384], index: 2, kind: input, shape index: {}]   ;;  %s1448_s3 = inlined_call_operand.hbm [shape: f32[2,8,128], index: 3, kind: output, shape index: {0}]   ;;  %s1449_s4 = inlined_call_operand.hbm [shape: f32[2,8,128], index: 4, kind: output, shape index: {1}]  }
   0x1   :  { %12 = vsyncpa [#allocation5 + $0x1], 0 }
   0x2   :  { %13 = vsyncpa [#allocation7], 0 }
   0x3   :  { %15 = vsyncpa [#allocation7 + $0x1], 0  ;;  %s1166_s15 = smov 0   ;;  %s1168_s16 = smov 0  }
   0x4   :  { %s1170_s17 = smov 0   ;;  %s1172_s18 = smov 0  }
   0x5   :  { %s1174_s19 = smov 0   ;;  %s1176_s20 = smov 0  }
   0x6 LB: > { %s824_s21 = sadd.s32 4294967295, %s1139_s20   ;;  %s825_s22 = sadd.s32 4294967294, %s1139_s20   ;;  %s1139_s20 = sphi %s1176_s20, %s21_s20   ;;  %s1135_s19 = sphi %s1174_s19, %s1456_s19   ;;  %s1131_s18 = sphi %s1172_s18, %s1455_s18   ;;  %s1127_s17 = sphi %s1170_s17, %s1454_s17   ;;  %s1123_s16 = sphi %s1168_s16, %s1453_s16   ;;  %s1119_s15 = sphi %s1166_s15, %s1452_s15  }
   0x7   : > { %s33_s23 = sadd.s32 1, %s1135_s19  ;;  %s110_s24 = sadd.s32 1, %s1127_s17 }
   0x8   : > { %p35_p0 = scmp.ge.s32.totalorder %s33_s23, 2  ;;  %p120_p1 = scmp.ne.s32.totalorder %s1127_s17, %s1123_s16 }
   0x9   : > { %p121_p2 = scmp.eq.s32.totalorder %s824_s21, 1  ;;  %p126_p3 = scmp.ne.s32.totalorder %s1123_s16, %s1119_s15 }
   0xa   : > { %s1458_s23 = smov (%p35_p0, %s33_s23), 0  ;;  %p127_p5 = scmp.eq.s32.totalorder %s825_s22, 1 }
   0xb   : > { %p1206_p4 = por %p121_p2, %p120_p1  ;;  %s105_s26 = ssub.s32 %s1135_s19, %s1458_s23 }
   0xc   : > { %p828_p6 = scmp.ge.s32.totalorder %s1139_s20, 1  ;;  %p108_p7 = scmp.eq.s32.totalorder %s105_s26, 0 }
   0xd   : > { %p1213_p8 = por %p127_p5, %p126_p3  ;;  %p187_p9 = scmp.lt.s32.totalorder %s1139_s20, 3 }
   0xe   : > { %s1219_s28 = scalar_select %p108_p7, %s1127_s17, %s110_s24  }
   0xf   : > { %p188_p10 = pnand %p828_p6, %p187_p9 }
  0x10   : > { %p218_p11 = scmp.lt.s32.totalorder (!%p188_p10), %s1131_s18, 1  ;;  %s1387_s30 = sand.u32 (!%p188_p10), 1, %s1123_s16  }
  0x11   : > { %191 = sbr.rel (%p188_p10) target bundleno = 699 (0x2bb), region = 32  ;;  %s829_s5 = sshll.u32 (!%p188_p10), %s1387_s30, 3 }
  0x12   : > { %s217_s6 = scalar_lea.vmem (!%p188_p10), [#allocation6], %s829_s5  ;;  %s900_s7 = sshll.u32 (!%p188_p10), %s1131_s18, 3 }
  0x13   : > { %s719_s8 = sshll.u32 (!%p188_p10), %s217_s6, 4  ;;  %s717_s11 = scalar_lea.hbm (!%p188_p10), %s1449_s4, %s900_s7  ;;  %s720_s8 = int_to_ptr.vmem [resolvable:$true] %s719_s8 }
  0x14   : > { %s691_s13 = scalar_lea.sflag (!%p188_p10), [#allocation7], %s1387_s30 }
  0x16   : > { %v249_v0 = vld [vmem:[%s1446_s1 + $0x50] sm:$0xff]  ;;  %v247_v1 = vld [vmem:[%s1446_s1 + $0x38] sm:$0xff]  ;;  %v245_v2 = vld [vmem:[%s1446_s1 + $0x20] sm:$0xff]  ;;  %s219_s9 = scalar_select %p218_p11, %s1131_s18, 1  ;;  %vm257_vm0 = vcmask 261120  }
  0x17   : > { %318 = vmatpush.msra.mxu0 %v249_v0  ;;  %960 = vmatpush.msra.mxu2 %v249_v0  ;;  %v243_v3 = vld [vmem:[%s1446_s1 + $0x8] sm:$0xff]  ;;  %v250_v15 = vld [vmem:[%s1446_s1 + $0x58] sm:$0xff]  ;;  %v248_v16 = vld [vmem:[%s1446_s1 + $0x40] sm:$0xff]  ;;  %s1049_s18 = scalar_lea.hbm %s1449_s4, 16 }
  0x18   : > { %s904_s12 = sshll.u32 %s219_s9, 7  ;;  %383 = vmatpush.msra.mxu1 %v250_v15  ;;  %v246_v17 = vld [vmem:[%s1446_s1 + $0x28] sm:$0xff]  ;;  %v244_v18 = vld [vmem:[%s1446_s1 + $0x10] sm:$0xff]  ;;  %v518_v22 = vld [vmem:[%s1446_s1 + $0x18] sm:$0xff] }
  0x19   : > { %319 = vmatpush.msra.mxu0 %v247_v1  ;;  %961 = vmatpush.msra.mxu2 %v247_v1  ;;  %s1238_s21 = scalar_lea.vmem %s1445_s0, %s904_s12  ;;  %v520_v20 = vld [vmem:[%s1446_s1 + $0x48] sm:$0xff]  ;;  %v519_v21 = vld [vmem:[%s1446_s1 + $0x30] sm:$0xff]  ;;  %v517_v23 = vld [vmem:[%s1446_s1] sm:$0xff]  ;;  %s721_s12 = sshll.u32 %s717_s11, 4  ;;  %s722_s12 = int_to_ptr.hbm [resolvable:$true] %s721_s12 }
  0x1a   : > { %v227_v4 = vld [vmem:[%s1238_s21] sm:$0xff]  ;;  %v228_v6 = vld [vmem:[%s1238_s21 + $0x8] sm:$0xff]  ;;  %v229_v8 = vld [vmem:[%s1238_s21 + $0x10] sm:$0xff]  ;;  %384 = vmatpush.msra.mxu1 %v248_v16  ;;  %s1043_s14 = sshra.s32 %s722_s12, 4  ;;  %s1044_s14 = int_to_ptr.hbm [resolvable:$true] %s1043_s14 }
  0x1b   : > { %320 = vmatpush.msra.mxu0 %v245_v2  ;;  %962 = vmatpush.msra.mxu2 %v245_v2  ;;  %v1242_v5 = vld [vmem:[%s1238_s21 + $0x60] sm:$0xff]  ;;  %v1249_v7 = vld [vmem:[%s1238_s21 + $0x68] sm:$0xff]  ;;  %v1256_v9 = vld [vmem:[%s1238_s21 + $0x70] sm:$0xff]  ;;  %s1045_s22 = scalar_lea.hbm %s1044_s14, 8  ;;  %p1050_p1 = scmp.lt.s32.totalorder %s1044_s14, %s1449_s4 }
  0x1c   : > { %v230_v10 = vld [vmem:[%s1238_s21 + $0x18] sm:$0xff]  ;;  %v231_v12 = vld [vmem:[%s1238_s21 + $0x20] sm:$0xff]  ;;  %v232_v13 = vld [vmem:[%s1238_s21 + $0x28] sm:$0xff]  ;;  %385 = vmatpush.msra.mxu1 %v246_v17  ;;  %p1046_p12 = scmp.ne.s32.totalorder %s1044_s14, %s1045_s22  ;;  %p1051_p2 = scmp.lt.s32.totalorder %s1049_s18, %s1045_s22 }
  0x1d   : > { %321 = vmatpush.msra.mxu0 %v243_v3  ;;  %963 = vmatpush.msra.mxu2 %v243_v3  ;;  %v1263_v11 = vld [vmem:[%s1238_s21 + $0x78] sm:$0xff]  ;;  %v233_v14 = vld [vmem:[%s1238_s21 + $0x30] sm:$0xff]  ;;  %v235_v24 = vld [vmem:[%s1238_s21 + $0x40] sm:$0xff] }
  0x1e   : > { %833 = vmatmul.msk.f32.vlgmr.msra.gmra.mxu0 %vm257_vm0, %v227_v4  ;;  %845 = vmatmul.msk.f32.vlgmr.msra.gmra.mxu2 %vm257_vm0, %v1242_v5  ;;  %v234_v19 = vld [vmem:[%s1238_s21 + $0x38] sm:$0xff]  ;;  %v236_v25 = vld [vmem:[%s1238_s21 + $0x48] sm:$0xff]  ;;  %v237_v26 = vld [vmem:[%s1238_s21 + $0x50] sm:$0xff]  ;;  %p1047_p13 = pnand %p1046_p12, %p1206_p4  ;;  %p1052_p3 = por %p1051_p2, %p1050_p1 }
  0x1f   : > { %386 = vmatpush.msra.mxu1 %v244_v18  ;;  %541 = vmatpush.msrb.mxu2 %v520_v20  ;;  %v238_v27 = vld [vmem:[%s1238_s21 + $0x58] sm:$0xff]  ;;  %v251_v35 = vld [vmem:[%s1447_s2 + $0x1] sm:$0x3] }
  0x20   : > { %849 = vmatmul.msk.f32.vlgmr.msra.gmra.mxu1 %vm257_vm0, %v227_v4  ;;  %v1334_v36 = vperm.slane %v251_v35, 0  ;;  %v1348_v51 = vperm.slane %v251_v35, 1  ;;  %p1048_p0 = pneg %p1047_p13 }
  0x21   : > { %542 = vmatpush.msrb.mxu2 %v519_v21 }
  0x22   : > { %p1053_p5 = pnand %p1052_p3, %p1048_p0 }
  0x23   : > { %543 = vmatpush.msrb.mxu2 %v518_v22 }
  0x25   : > { %544 = vmatpush.msrb.mxu2 %v517_v23 }
  0x26   : > { %834 = vmatmul.msk.f32.gmra.mxu0 %vm257_vm0, %v228_v6  ;;  %846 = vmatmul.msk.f32.gmra.mxu2 %vm257_vm0, %v1249_v7 }
  0x28   : > { %850 = vmatmul.msk.f32.gmra.mxu1 %vm257_vm0, %v228_v6 }
  0x2e   : > { %835 = vmatmul.msk.f32.gmra.mxu0 %vm257_vm0, %v229_v8  ;;  %847 = vmatmul.msk.f32.gmra.mxu2 %vm257_vm0, %v1256_v9 }
  0x30   : > { %851 = vmatmul.msk.f32.gmra.mxu1 %vm257_vm0, %v229_v8 }
  0x36   : > { %836 = vmatmul.msk.f32.gmra.mxu0 %vm257_vm0, %v230_v10  ;;  %848 = vmatmul.msk.f32.gmra.mxu2 %vm257_vm0, %v1263_v11 }
  0x38   : > { %852 = vmatmul.msk.f32.gmra.mxu1 %vm257_vm0, %v230_v10 }
  0x3e   : > { %837 = vmatmul.msk.f32.gmra.mxu0 %vm257_vm0, %v231_v12  ;;  %865 = vmatmul.msk.f32.vlgmr.msrb.gmra.mxu2 %vm257_vm0, %v227_v4 }
  0x40   : > { %853 = vmatmul.msk.f32.gmra.mxu1 %vm257_vm0, %v231_v12 }
  0x46   : > { %838 = vmatmul.msk.f32.gmra.mxu0 %vm257_vm0, %v232_v13 }
  0x48   : > { %854 = vmatmul.msk.f32.gmra.mxu1 %vm257_vm0, %v232_v13 }
  0x4e   : > { %839 = vmatmul.msk.f32.gmra.mxu0 %vm257_vm0, %v233_v14 }
  0x50   : > { %855 = vmatmul.msk.f32.gmra.mxu1 %vm257_vm0, %v233_v14 }
  0x56   : > { %840 = vmatmul.msk.f32.gmra.mxu0 %vm257_vm0, %v234_v19 }
  0x58   : > { %856 = vmatmul.msk.f32.gmra.mxu1 %vm257_vm0, %v234_v19 }
  0x5e   : > { %841 = vmatmul.msk.f32.gmra.mxu0 %vm257_vm0, %v235_v24 }
  0x60   : > { %857 = vmatmul.msk.f32.gmra.mxu1 %vm257_vm0, %v235_v24 }
  0x66   : > { %842 = vmatmul.msk.f32.gmra.mxu0 %vm257_vm0, %v236_v25 }
  0x68   : > { %858 = vmatmul.msk.f32.gmra.mxu1 %vm257_vm0, %v236_v25 }
  0x6e   : > { %843 = vmatmul.msk.f32.gmra.mxu0 %vm257_vm0, %v237_v26 }
  0x70   : > { %859 = vmatmul.msk.f32.gmra.mxu1 %vm257_vm0, %v237_v26 }
  0x76   : > { %844 = vmatmul.msk.f32.gmra.mxu0 %vm257_vm0, %v238_v27 }
  0x78   : > { %860 = vmatmul.msk.f32.gmra.mxu1 %vm257_vm0, %v238_v27 }
  0x80   : > { %861 = vmatmul.msk.f32.gmra.mxu1 %vm257_vm0, %v1242_v5 }
  0x88   : > { %862 = vmatmul.msk.f32.gmra.mxu1 %vm257_vm0, %v1249_v7 }
  0x90   : > { %863 = vmatmul.msk.f32.gmra.mxu1 %vm257_vm0, %v1256_v9 }
  0x98   : > { %864 = vmatmul.msk.f32.gmra.mxu1 %vm257_vm0, %v1263_v11 }
  0x9b   : > { %v1318_v28 = vpop.f32.mrf.mxu0 }
  0x9d   : > { %v388_v50 = vpop.f32.mrf.mxu1 }
  0x9e   : > { %v389_v52 = vadd.f32 %v388_v50, %v1348_v51 }
  0xa0   : > { %v437_v55 = vmax.f32 %v389_v52, 0.0 }
  0xa1   : > { %v359_v29 = vpop.f32.mrf.mxu2 }
  0xa2   : > { %v360_v44 = vadd.f32 %v359_v29, %v1334_v36 }
  0xa3   : > { %v1321_v30 = vpop.f32.mrf.mxu0 }
  0xa4   : > { %v460_v47 = vmax.f32 %v360_v44, 0.0 }
  0xa5   : > { %v391_v54 = vpop.f32.mrf.mxu1 }
  0xa6   : > { %v392_v56 = vadd.f32 %v391_v54, %v1348_v51 }
  0xa8   : > { %v439_v57 = vmax.f32 %v392_v56, 0.0 }
  0xa9   : > { %v362_v31 = vpop.f32.mrf.mxu2 }
  0xaa   : > { %v363_v42 = vadd.f32 %v362_v31, %v1334_v36  ;;  %v916_v58 = vpack.c.bf16 %v439_v57, %v437_v55 }
  0xab   : > { %v1324_v32 = vpop.f32.mrf.mxu0 }
  0xac   : > { %v462_v45 = vmax.f32 %v363_v42, 0.0  ;;  %917 = vst [vmem:[#allocation3 + $0x30] sm:$0xff] %v916_v58  }
  0xad   : > { %v394_v60 = vpop.f32.mrf.mxu1 }
  0xae   : > { %v395_v61 = vadd.f32 %v394_v60, %v1348_v51 }
  0xb0   : > { %v441_v0 = vmax.f32 %v395_v61, 0.0 }
  0xb1   : > { %v365_v33 = vpop.f32.mrf.mxu2 }
  0xb2   : > { %v366_v38 = vadd.f32 %v365_v33, %v1334_v36 }
  0xb3   : > { %v1327_v34 = vpop.f32.mrf.mxu0 }
  0xb4   : > { %v464_v43 = vmax.f32 %v366_v38, 0.0 }
  0xb5   : > { %v397_v63 = vpop.f32.mrf.mxu1 }
  0xb6   : > { %v398_v1 = vadd.f32 %v397_v63, %v1348_v51 }
  0xb8   : > { %v443_v2 = vmax.f32 %v398_v1, 0.0 }
  0xb9   : > { %v368_v37 = vpop.f32.mrf.mxu2 }
  0xba   : > { %v369_v39 = vadd.f32 %v368_v37, %v1334_v36  ;;  %v921_v3 = vpack.c.bf16 %v443_v2, %v441_v0 }
  0xbb   : > { %v1338_v40 = vpop.f32.mrf.mxu0 }
  0xbc   : > { %v466_v41 = vmax.f32 %v369_v39, 0.0  ;;  %953 = vst [vmem:[#allocation3] sm:$0xff] %v921_v3   ;;  %v336_v33 = vadd.f32 %v1338_v40, %v1334_v36  ;;  %v333_v39 = vadd.f32 %v1327_v34, %v1334_v36  ;;  %v327_v40 = vadd.f32 %v1321_v30, %v1334_v36 }
  0xbd   : > { %v400_v6 = vpop.f32.mrf.mxu1 }
  0xbe   : > { %566 = vmatpush.xpose.msra.mxu3 %v466_v41  ;;  %v401_v9 = vadd.f32 %v400_v6, %v1348_v51  ;;  %v444_v41 = vmax.f32 %v336_v33, 0.0  ;;  %v442_v44 = vmax.f32 %v333_v39, 0.0  ;;  %v438_v52 = vmax.f32 %v327_v40, 0.0 }
  0xc0   : > { %v445_v13 = vmax.f32 %v401_v9, 0.0 }
  0xc1   : > { %v546_v34 = vpop.f32.mrf.mxu2 }
  0xc2   : > { %567 = vmatpush.xpose.msra.mxu3 %v464_v43  ;;  %v330_v43 = vadd.f32 %v1324_v32, %v1334_v36  ;;  %v324_v32 = vadd.f32 %v1318_v28, %v1334_v36 }
  0xc3   : > { %v338_v46 = vpop.f32.mrf.mxu0 }
  0xc4   : > { %v339_v25 = vadd.f32 %v338_v46, %v1334_v36  ;;  %v440_v46 = vmax.f32 %v330_v43, 0.0  ;;  %v436_v30 = vmax.f32 %v324_v32, 0.0 }
  0xc5   : > { %v403_v12 = vpop.f32.mrf.mxu1 }
  0xc6   : > { %568 = vmatpush.xpose.msra.mxu3 %v462_v45  ;;  %v404_v14 = vadd.f32 %v403_v12, %v1348_v51  ;;  %v446_v35 = vmax.f32 %v339_v25, 0.0 }
  0xc8   : > { %v447_v17 = vmax.f32 %v404_v14, 0.0 }
  0xca   : > { %569 = vmatpush.xpose.msra.mxu3 %v460_v47  ;;  %v926_v18 = vpack.c.bf16 %v447_v17, %v445_v13  ;;  %v1024_v47 = vld [vmem:[%s1447_s2] ss:$0 sm:$0xff] }
  0xcb   : > { %v341_v48 = vpop.f32.mrf.mxu0 }
  0xcc   : > { %954 = vst [vmem:[#allocation3 + $0x18] sm:$0xff] %v926_v18   ;;  %v342_v22 = vadd.f32 %v341_v48, %v1334_v36  ;;  %v906_v18 = vld [vmem:[#allocation3] sm:$0xff] }
  0xcd   : > { %v406_v21 = vpop.f32.mrf.mxu1 }
  0xce   : > { %v407_v24 = vadd.f32 %v406_v21, %v1348_v51  ;;  %v448_v26 = vmax.f32 %v342_v22, 0.0 }
  0xd0   : > { %v449_v29 = vmax.f32 %v407_v24, 0.0 }
  0xd3   : > { %v344_v49 = vpop.f32.mrf.mxu0  ;;  %v907_v17 = vld [vmem:[#allocation3 + $0x18] sm:$0xff] }
  0xd4   : > { %v345_v19 = vadd.f32 %v344_v49, %v1334_v36 }
  0xd5   : > { %v409_v27 = vpop.f32.mrf.mxu1 }
  0xd6   : > { %v450_v23 = vmax.f32 %v345_v19, 0.0  ;;  %v410_v31 = vadd.f32 %v409_v27, %v1348_v51  ;;  %v905_v19 = vld [vmem:[#allocation3 + $0x30] sm:$0xff] }
  0xd8   : > { %v451_v37 = vmax.f32 %v410_v31, 0.0 }
  0xda   : > { %v931_v38 = vpack.c.bf16 %v451_v37, %v449_v29 }
  0xdb   : > { %v347_v53 = vpop.f32.mrf.mxu0 }
  0xdc   : > { %v348_v15 = vadd.f32 %v347_v53, %v1334_v36  ;;  %955 = vst [vmem:[#allocation3 + $0x10] sm:$0xff] %v931_v38   ;;  %v547_v53 = vadd.f32 %v1024_v47, %v546_v34 }
  0xdd   : > { %v412_v42 = vpop.f32.mrf.mxu1 }
  0xde   : > { %v452_v20 = vmax.f32 %v348_v15, 0.0  ;;  %v413_v45 = vadd.f32 %v412_v42, %v1348_v51  ;;  %v549_v56 = vmax.f32 %v547_v53, 0.0 }
  0xe0   : > { %v453_v49 = vmax.f32 %v413_v45, 0.0 }
  0xe3   : > { %v350_v59 = vpop.f32.mrf.mxu0 }
  0xe4   : > { %v351_v10 = vadd.f32 %v350_v59, %v1334_v36 }
  0xe5   : > { %v415_v48 = vpop.f32.mrf.mxu1 }
  0xe6   : > { %v454_v16 = vmax.f32 %v351_v10, 0.0  ;;  %v416_v50 = vadd.f32 %v415_v48, %v1348_v51 }
  0xe8   : > { %v455_v54 = vmax.f32 %v416_v50, 0.0 }
  0xea   : > { %v936_v55 = vpack.c.bf16 %v455_v54, %v453_v49 }
  0xeb   : > { %v353_v62 = vpop.f32.mrf.mxu0 }
  0xec   : > { %v354_v7 = vadd.f32 %v353_v62, %v1334_v36  ;;  %956 = vst [vmem:[#allocation3 + $0x8] sm:$0xff] %v936_v55  }
  0xed   : > { %v418_v57 = vpop.f32.mrf.mxu1 }
  0xee   : > { %v456_v11 = vmax.f32 %v354_v7, 0.0  ;;  %v419_v58 = vadd.f32 %v418_v57, %v1348_v51 }
  0xf0   : > { %v457_v60 = vmax.f32 %v419_v58, 0.0 }
  0xf3   : > { %v356_v4 = vpop.f32.mrf.mxu0  ;;  %v909_v15 = vld [vmem:[#allocation3 + $0x8] sm:$0xff] }
  0xf4   : > { %v357_v5 = vadd.f32 %v356_v4, %v1334_v36 }
  0xf5   : > { %v421_v59 = vpop.f32.mrf.mxu1 }
  0xf6   : > { %v458_v8 = vmax.f32 %v357_v5, 0.0  ;;  %v422_v61 = vadd.f32 %v421_v59, %v1348_v51 }
  0xf8   : > { %570 = vmatpush.xpose.msra.mxu3 %v458_v8  ;;  %v459_v62 = vmax.f32 %v422_v61, 0.0 }
  0xfa   : > { %v941_v63 = vpack.c.bf16 %v459_v62, %v457_v60 }
  0xfc   : > { %571 = vmatpush.xpose.msra.mxu3 %v456_v11  ;;  %957 = vst [vmem:[#allocation3 + $0x20] sm:$0xff] %v941_v63  }
  0xfd   : > { %v424_v28 = vpop.f32.mrf.mxu1 }
  0xfe   : > { %v425_v36 = vadd.f32 %v424_v28, %v1348_v51 }
 0x100   : > { %572 = vmatpush.xpose.msra.mxu3 %v454_v16  ;;  %v461_v1 = vmax.f32 %v425_v36, 0.0  ;;  %v908_v16 = vld [vmem:[#allocation3 + $0x10] sm:$0xff] }
 0x103   : > { %v910_v14 = vld [vmem:[#allocation3 + $0x20] sm:$0xff] }
 0x104   : > { %573 = vmatpush.xpose.msra.mxu3 %v452_v20 }
 0x105   : > { %v427_v0 = vpop.f32.mrf.mxu1 }
 0x106   : > { %v428_v2 = vadd.f32 %v427_v0, %v1348_v51 }
 0x108   : > { %574 = vmatpush.xpose.msra.mxu3 %v450_v23  ;;  %v463_v3 = vmax.f32 %v428_v2, 0.0 }
 0x10a   : > { %v946_v4 = vpack.c.bf16 %v463_v3, %v461_v1 }
 0x10c   : > { %575 = vmatpush.xpose.msra.mxu3 %v448_v26  ;;  %958 = vst [vmem:[#allocation3 + $0x28] sm:$0xff] %v946_v4  }
 0x10d   : > { %v430_v5 = vpop.f32.mrf.mxu1 }
 0x10e   : > { %v431_v6 = vadd.f32 %v430_v5, %v1348_v51 }
 0x110   : > { %576 = vmatpush.xpose.msra.mxu3 %v446_v35  ;;  %v465_v8 = vmax.f32 %v431_v6, 0.0 }
 0x113   : > { %v911_v13 = vld [vmem:[#allocation3 + $0x28] sm:$0xff] }
 0x114   : > { %577 = vmatpush.xpose.msra.mxu3 %v444_v41 }
 0x115   : > { %v433_v7 = vpop.f32.mrf.mxu1 }
 0x116   : > { %v434_v9 = vadd.f32 %v433_v7, %v1348_v51  ;;  %v587_v51 = vlaneseq }
 0x118   : > { %578 = vmatpush.xpose.msra.mxu3 %v442_v44  ;;  %v467_v10 = vmax.f32 %v434_v9, 0.0  ;;  %v588_v20 = vand.u32 127, %v587_v51 }
 0x11a   : > { %v951_v11 = vpack.c.bf16 %v467_v10, %v465_v8  ;;  %vm589_vm1 = vcmp.lt.s32.totalorder %v588_v20, 8 }
 0x11c   : > { %579 = vmatpush.xpose.msra.mxu3 %v440_v46  ;;  %959 = vst [vmem:[#allocation3 + $0x38] sm:$0xff] %v951_v11  }
 0x120   : > { %580 = vmatpush.xpose.msra.mxu3 %v438_v52 }
 0x123   : > { %v912_v12 = vld [vmem:[#allocation3 + $0x38] sm:$0xff] }
 0x124   : > { %581 = vmatpush.xpose.msra.mxu3 %v436_v30  ;;  %666 = vmatpush.bf16.msra.mxu2 %v912_v12 }
 0x127   : > { %582 = vmatmul.f32.vlgmr.msra.gmra.mxu3 %v549_v56 }
 0x128   : > { %667 = vmatpush.bf16.msra.mxu2 %v911_v13 }
 0x12c   : > { %668 = vmatpush.bf16.msra.mxu2 %v910_v14 }
 0x130   : > { %669 = vmatpush.bf16.msra.mxu2 %v909_v15 }
 0x134   : > { %670 = vmatpush.bf16.msra.mxu2 %v908_v16 }
 0x138   : > { %671 = vmatpush.bf16.msra.mxu2 %v907_v17 }
 0x13c   : > { %672 = vmatpush.bf16.msra.mxu2 %v906_v18 }
 0x140   : > { %673 = vmatpush.bf16.msra.mxu2 %v905_v19 }
 0x1aa   : > { %v583_v21 = vpop.f32.mrf.mxu3 }
 0x1ab   : > { %586 = vst [vmem:[%s217_s6] sm:$0xff] %v583_v21  ;;  %v590_v22 = vmul.f32 0.17677669, %v583_v21 }
 0x1ad   : > { %v593_v23 = vsel %vm589_vm1, %v590_v22, -1e+30 }
 0x1ae   : > { %594 = vmax.xlane.f32.xlu0 %v593_v23 }
 0x221   : > { %v595_v24 = vpop.xlane.xlu0 %594 }
 0x222   : > { %v596_v25 = vsub.f32 %v593_v23, %v595_v24 }
 0x224   : > { %v597_v26 = vmul.f32 1.442695, %v596_v25 }
 0x226   : > { %1025 = vpow2.f32 %v597_v26 }
 0x22c   : > { %v1026_v27 = vpop.eup %1025 }
 0x22d   : > { %599 = vadd.xlane.f32.xlu0 %v1026_v27  ;;  %v601_v29 = vpack.c.bf16 %v1026_v27, %v1026_v27 }
 0x22f   : > { %674 = vmatmul.bf16.vlgmr.msra.gmra.mxu2 %v601_v29 }
 0x230   : > { %1056 = shalt.err (!%p1053_p5)
}
 0x231   : > { %965 = dma.vmem_to_hbm [thread:$0]  (%p1206_p4), %s720_s8, 128, %s722_s12, %s691_s13  }
 0x232   : > { %s702_s10 = scalar_lea.hbm %s1448_s3, %s900_s7  ;;  %s210_s11 = scalar_lea.vmem [#allocation4], %s829_s5 }
 0x233   : > { %s704_s14 = sshll.u32 %s210_s11, 4  ;;  %s706_s22 = sshll.u32 %s702_s10, 4  ;;  %s705_s14 = int_to_ptr.vmem [resolvable:$true] %s704_s14  ;;  %s707_s22 = int_to_ptr.hbm [resolvable:$true] %s706_s22 }
 0x234   : > { %s686_s8 = scalar_lea.sflag [#allocation5], %s1387_s30  ;;  %s1071_s12 = sshra.s32 %s707_s22, 4  ;;  %s1072_s12 = int_to_ptr.hbm [resolvable:$true] %s1071_s12 }
 0x235   : > { %s1073_s13 = scalar_lea.hbm %s1072_s12, 8  ;;  %s1077_s5 = scalar_lea.hbm %s1448_s3, 16 }
 0x236   : > { %p1074_p6 = scmp.ne.s32.totalorder %s1072_s12, %s1073_s13  ;;  %p1078_p10 = scmp.lt.s32.totalorder %s1072_s12, %s1448_s3 }
 0x237   : > { %p1079_p11 = scmp.lt.s32.totalorder %s1077_s5, %s1073_s13 }
 0x238   : > { %p1075_p7 = pnand %p1074_p6, %p1206_p4 }
 0x239   : > { %p1080_p12 = por %p1079_p11, %p1078_p10 }
 0x23a   : > { %p1076_p9 = pneg %p1075_p7 }
 0x23c   : > { %p1081_p13 = pnand %p1080_p12, %p1076_p9 }
 0x2a0   : > { %v600_v31 = vpop.xlane.xlu0 %599 }
 0x2a1   : > { %1027 = vrcp.f32 %v600_v31 }
 0x2a7   : > { %v1028_v33 = vpop.eup %1027 }
 0x2a8   : > { %v680_v35 = vmul.f32 %v1028_v33, %v600_v31 }
 0x2aa   : > { %v681_v37 = vsub.f32 2.0, %v680_v35 }
 0x2ac   : > { %v682_v38 = vmul.f32 %v1028_v33, %v681_v37 }
 0x2b2   : > { %v675_v39 = vpop.f32.mrf.mxu2 }
 0x2b3   : > { %v683_v41 = vmul.f32 %v682_v38, %v675_v39 }
 0x2b5   : > { %684 = vst [vmem:[%s210_s11] sm:$0xff] %v683_v41 }
 0x2b6   : > { %1084 = shalt.err (!%p1081_p13)
}
 0x2b7   : > { %964 = dma.vmem_to_hbm [thread:$0]  (%p1206_p4), %s705_s14, 128, %s707_s22, %s686_s8  }
 0x2ba   : > { %v677_v42 = vpop.f32.mrf.mxu2 }
 0x2bb PF: > { %p975_p0 = scmp.ge.s32.totalorder %s1139_s20, 2  ;;  %s733_s30 = sand.u32 1, %s1119_s15  }
 0x2bc   : > { %s734_s26 = scalar_lea.sflag [#allocation5], %s733_s30 }
 0x2bd   : > { %p969_p1 = pnand %p975_p0, %p1213_p8 }
 0x2bf   : > { %p970_p2 = pneg %p969_p1 }
 0x2c1   : > { %1110 = dma.done.wait (%p970_p2), %s734_s26, 128  }
 0x2c2   : > { %1112 = vsyncadd (%p970_p2), %s734_s26, 4294967168  ;;  %s744_s29 = scalar_lea.sflag [#allocation7], %s733_s30 }
 0x2c3   : > { %1114 = dma.done.wait (%p970_p2), %s744_s29, 128  }
 0x2c4   : > { %1116 = vsyncadd (%p970_p2), %s744_s29, 4294967168  ;;  %s21_s20 = sadd.s32 1, %s1139_s20   ;;  %s1452_s15 = smov %s1123_s16 }
 0x2c5   : > { %p18_p3 = scmp.ge.s32.totalorder %s21_s20, 4   ;;  %s1453_s16 = smov %s1127_s17 }
 0x2c6   : > { %s1454_s17 = smov %s1219_s28  ;;  %s1455_s18 = smov %s1135_s19 }
 0x2c7   : > { %s1456_s19 = smov %s1458_s23  ;;  %20 = sbr.rel (!%p18_p3) target bundleno = 6 (0x6), region = 88 }
 0x2cc   :  { %750 = vsyncpa [#allocation5], 1 }
 0x2cd   :  { %752 = vsyncpa [#allocation5 + $0x1], 1 }
 0x2ce   :  { %753 = vsyncpa [#allocation7], 1 }
 0x2cf   :  { %755 = vsyncpa [#allocation7 + $0x1], 1 }

</bundles_post_ra>
